<compile_context>
chip_gen: v7x
topology: tpu7x:2x2x1
jax: 0.10.0
libtpu: 0.0.40
codegen_flags: <defaults>
</compile_context>

<pallas_src>
import jax
import jax.numpy as jnp
from jax.experimental import pallas as pl
from jax.experimental.pallas import tpu as pltpu


def _ce_dice_kernel(pred_ref, tgt_ref, inter_ref, zsum_ref, ysum_ref, ce_ref):
    """One (batch b, pixel-tile i) grid step.

    pred_ref : [C, TN]   logits (any float dtype, cast to f32 in-kernel)
    tgt_ref  : [1, TN]   int32 labels
    inter/zsum/ysum_ref : [C, 1] f32 per-(batch, class) partial sums (resident)
    ce_ref   : [1, 1]    f32 per-batch partial CE sum (resident)
    """
    i = pl.program_id(1)  # inner reduction axis (pixel tiles)

    @pl.when(i == 0)
    def _():
        inter_ref[...] = jnp.zeros_like(inter_ref)
        zsum_ref[...] = jnp.zeros_like(zsum_ref)
        ysum_ref[...] = jnp.zeros_like(ysum_ref)
        ce_ref[...] = jnp.zeros_like(ce_ref)

    x = pred_ref[...].astype(jnp.float32)                      # [C, TN]
    t = tgt_ref[...]                                           # [1, TN] int32

    cls_idx = jax.lax.broadcasted_iota(jnp.int32, x.shape, 0)  # [C, TN]
    onehot = (cls_idx == t).astype(jnp.float32)                # [C, TN]

    # Numerically-stable softmax / log-sum-exp over the class (sublane) axis.
    m = jnp.max(x, axis=0, keepdims=True)                      # [1, TN]
    e = jnp.exp(x - m)                                         # [C, TN]
    s = jnp.sum(e, axis=0, keepdims=True)                      # [1, TN]
    inv = pl.reciprocal(s, approx=True)                        # EUP slot, off the VALU path
    p = e * inv                                                # softmax
    logz = m + jnp.log(s)                                      # [1, TN]

    # Cross-entropy: sum_px (logsumexp - logit[target]).
    # Relies on sum_c onehot == 1 (in-range labels), avoiding a [C, TN] broadcast of logz.
    ce_ref[...] += (jnp.sum(logz) - jnp.sum(x * onehot)).reshape(1, 1)

    # Dice accumulators (per class, summed over this tile's pixels).
    inter_ref[...] += jnp.sum(p * onehot, axis=1, keepdims=True)  # [C, 1]
    zsum_ref[...] += jnp.sum(p * p, axis=1, keepdims=True)        # [C, 1]
    ysum_ref[...] += jnp.sum(onehot, axis=1, keepdims=True)       # [C, 1]


def _pick_tile_n(hw, n_classes, vmem_budget_bytes=6 * 1024 * 1024):
    """Largest legal pixel-tile width that keeps the working set within budget.

    Rough per-pixel working set: double-buffered inputs (logits + labels) plus
    ~8 live [C, tile] f32 temporaries in the kernel body.  Budget is conservative
    w.r.t. default scoped VMEM on v5e/v6e/v7x.
    """
    per_px_bytes = 4 * (2 * (n_classes + 1) + 8 * n_classes)
    cap = max(256, vmem_budget_bytes // per_px_bytes)
    if hw <= cap:
        return hw  # single full-row block per batch element (always legal)
    best = None
    d = 128
    while d <= cap:           # largest multiple-of-128 divisor of hw within budget
        if hw % d == 0:
            best = d
        d += 128
    # Fall back to one full-width block if no 128-multiple divisor fits the budget.
    return best if best is not None else hw


def ce_dice_loss(pred_nchw, target_bhw, loss_weight=(0.4, 0.6), tile_n=None):
    """pred_nchw: [B, C, H, W] float logits (f32 or bf16); target_bhw: [B, H, W] int labels."""
    B, C, H, W = pred_nchw.shape
    HW = H * W
    N = B * HW
    if tile_n is None:
        tile_n = _pick_tile_n(HW, C)
    assert HW % tile_n == 0, "pixel count per image must be divisible by the tile size"

    # Free reshapes only — no transpose, no dtype change of the big logits tensor.
    pred_bcn = pred_nchw.reshape(B, C, HW)
    tgt_b1n = target_bhw.reshape(B, 1, HW).astype(jnp.int32)

    out_shapes = (
        jax.ShapeDtypeStruct((B, C, 1), jnp.float32),  # per-(batch, class) intersect
        jax.ShapeDtypeStruct((B, C, 1), jnp.float32),  # per-(batch, class) z_sum
        jax.ShapeDtypeStruct((B, C, 1), jnp.float32),  # per-(batch, class) y_sum
        jax.ShapeDtypeStruct((B, 1, 1), jnp.float32),  # per-batch CE sum
    )

    inter_b, zsum_b, ysum_b, ce_b = pl.pallas_call(
        _ce_dice_kernel,
        out_shape=out_shapes,
        grid_spec=pltpu.PrefetchScalarGridSpec(
            num_scalar_prefetch=0,
            grid=(B, HW // tile_n),
            in_specs=[
                pl.BlockSpec((pl.Squeezed(), C, tile_n), lambda b, i: (b, 0, i)),
                pl.BlockSpec((pl.Squeezed(), 1, tile_n), lambda b, i: (b, 0, i)),
            ],
            out_specs=[
                pl.BlockSpec((pl.Squeezed(), C, 1), lambda b, i: (b, 0, 0)),
                pl.BlockSpec((pl.Squeezed(), C, 1), lambda b, i: (b, 0, 0)),
                pl.BlockSpec((pl.Squeezed(), C, 1), lambda b, i: (b, 0, 0)),
                pl.BlockSpec((pl.Squeezed(), 1, 1), lambda b, i: (b, 0, 0)),
            ],
        ),
        compiler_params=pltpu.CompilerParams(
            # batch axis shardable across TensorCores (v7x megacore); pixel-tile
            # axis is the reduction axis.
            dimension_semantics=("parallel", "arbitrary"),
        ),
    )(pred_bcn, tgt_b1n)

    # Tiny final combine in plain JAX (also keeps megacore partials independent).
    smooth = jnp.float32(1e-5)
    inter = jnp.sum(inter_b[:, :, 0], axis=0)   # [C]
    zsum = jnp.sum(zsum_b[:, :, 0], axis=0)     # [C]
    ysum = jnp.sum(ysum_b[:, :, 0], axis=0)     # [C]
    dice = 1.0 - (2.0 * inter + smooth) / (zsum + ysum + smooth)
    dice_loss = jnp.sum(dice) / jnp.float32(C)
    ce_mean = jnp.sum(ce_b) / jnp.float32(N)
    return (jnp.float32(loss_weight[0]) * ce_mean
            + jnp.float32(loss_weight[1]) * dice_loss)


def _reference_ce_dice(pred, target, loss_weight=(0.4, 0.6)):
    """Pure-JAX reference mirroring the PyTorch CeDiceLoss semantics."""
    B, C, H, W = pred.shape
    logits = pred.astype(jnp.float32)
    logp = jax.nn.log_softmax(logits, axis=1)
    onehot = jax.nn.one_hot(target, C, axis=1, dtype=jnp.float32)
    ce = -jnp.sum(logp * onehot) / (B * H * W)
    p = jax.nn.softmax(logits, axis=1)
    smooth = 1e-5
    inter = jnp.sum(p * onehot, axis=(0, 2, 3))
    y_sum = jnp.sum(onehot * onehot, axis=(0, 2, 3))
    z_sum = jnp.sum(p * p, axis=(0, 2, 3))
    dice = 1.0 - (2 * inter + smooth) / (z_sum + y_sum + smooth)
    dice_loss = jnp.sum(dice) / C
    return loss_weight[0] * ce + loss_weight[1] * dice_loss


# TODO(synk): no class weights / ignore_index support (PyTorch CrossEntropyLoss defaults only).

if __name__ == "__main__":
    key = jax.random.PRNGKey(0)
    k1, k2 = jax.random.split(key)

    B, C, H, W = 2, 4, 16, 16
    pred = jax.random.normal(k1, (B, C, H, W), dtype=jnp.float32)
    target = jax.random.randint(k2, (B, H, W), 0, C, dtype=jnp.int32)

    loss = jax.block_until_ready(ce_dice_loss(pred, target))
    ref = jax.block_until_ready(_reference_ce_dice(pred, target))

    # Tolerance slightly loosened vs exact division because the softmax uses the
    # EUP approximate reciprocal (rel. error << 1e-3 on the O(1) loss value).
    assert jnp.allclose(loss, ref, atol=1e-3, rtol=1e-3), (loss, ref)

    print("KERNEL_OK")
</pallas_src>

<mosaic_0001>
module attributes {stable_mosaic.version = 11 : i64} {
  func.func @_ce_dice_kernel(%arg0: i32, %arg1: i32, %arg2: memref<1x4x256xf32, #tpu.memory_space<vmem>>, %arg3: memref<1x1x256xi32, #tpu.memory_space<vmem>>, %arg4: memref<1x4x1xf32, #tpu.memory_space<vmem>>, %arg5: memref<1x4x1xf32, #tpu.memory_space<vmem>>, %arg6: memref<1x4x1xf32, #tpu.memory_space<vmem>>, %arg7: memref<1x1x1xf32, #tpu.memory_space<vmem>>) attributes {dimension_semantics = [#tpu.dimension_semantics<parallel>, #tpu.dimension_semantics<arbitrary>], iteration_bounds = array<i64: 2, 1>, scalar_prefetch = 0 : i64, scratch_operands = 0 : i64, tpu.core_type = #tpu.core_type<tc>, window_params = [{transform_indices = @transform_0, window_bounds = array<i64: 1, 4, 256>}, {transform_indices = @transform_1, window_bounds = array<i64: 1, 1, 256>}, {transform_indices = @transform_2, window_bounds = array<i64: 1, 4, 1>}, {transform_indices = @transform_3, window_bounds = array<i64: 1, 4, 1>}, {transform_indices = @transform_4, window_bounds = array<i64: 1, 4, 1>}, {transform_indices = @transform_5, window_bounds = array<i64: 1, 1, 1>}]} {
    %c0_i32 = arith.constant 0 : i32
    %0 = arith.cmpi eq, %arg1, %c0_i32 : i32
    %1 = arith.extui %0 : i1 to i32
    %c0_i32_0 = arith.constant 0 : i32
    %2 = arith.cmpi ne, %1, %c0_i32_0 : i32
    scf.if %2 {
      %cst_36 = arith.constant 0.000000e+00 : f32
      %67 = vector.broadcast %cst_36 : f32 to vector<4x1xf32>
      %c0_37 = arith.constant 0 : index
      %c0_38 = arith.constant 0 : index
      %c0_39 = arith.constant 0 : index
      %68 = vector.load %arg4[%c0_37, %c0_38, %c0_39] : memref<1x4x1xf32, #tpu.memory_space<vmem>>, vector<1x4x1xf32>
      %69 = vector.shape_cast %68 : vector<1x4x1xf32> to vector<4x1xf32>
      %70 = vector.shape_cast %67 : vector<4x1xf32> to vector<1x4x1xf32>
      tpu.vector_store %arg4[%c0_37, %c0_38, %c0_39], %70 {strides = array<i32>} : memref<1x4x1xf32, #tpu.memory_space<vmem>>, vector<1x4x1xf32>,
      %cst_40 = arith.constant 0.000000e+00 : f32
      %71 = vector.broadcast %cst_40 : f32 to vector<4x1xf32>
      %c0_41 = arith.constant 0 : index
      %c0_42 = arith.constant 0 : index
      %c0_43 = arith.constant 0 : index
      %72 = vector.load %arg5[%c0_41, %c0_42, %c0_43] : memref<1x4x1xf32, #tpu.memory_space<vmem>>, vector<1x4x1xf32>
      %73 = vector.shape_cast %72 : vector<1x4x1xf32> to vector<4x1xf32>
      %74 = vector.shape_cast %71 : vector<4x1xf32> to vector<1x4x1xf32>
      tpu.vector_store %arg5[%c0_41, %c0_42, %c0_43], %74 {strides = array<i32>} : memref<1x4x1xf32, #tpu.memory_space<vmem>>, vector<1x4x1xf32>,
      %cst_44 = arith.constant 0.000000e+00 : f32
      %75 = vector.broadcast %cst_44 : f32 to vector<4x1xf32>
      %c0_45 = arith.constant 0 : index
      %c0_46 = arith.constant 0 : index
      %c0_47 = arith.constant 0 : index
      %76 = vector.load %arg6[%c0_45, %c0_46, %c0_47] : memref<1x4x1xf32, #tpu.memory_space<vmem>>, vector<1x4x1xf32>
      %77 = vector.shape_cast %76 : vector<1x4x1xf32> to vector<4x1xf32>
      %78 = vector.shape_cast %75 : vector<4x1xf32> to vector<1x4x1xf32>
      tpu.vector_store %arg6[%c0_45, %c0_46, %c0_47], %78 {strides = array<i32>} : memref<1x4x1xf32, #tpu.memory_space<vmem>>, vector<1x4x1xf32>,
      %cst_48 = arith.constant 0.000000e+00 : f32
      %79 = vector.broadcast %cst_48 : f32 to vector<1x1xf32>
      %c0_49 = arith.constant 0 : index
      %c0_50 = arith.constant 0 : index
      %c0_51 = arith.constant 0 : index
      %80 = vector.load %arg7[%c0_49, %c0_50, %c0_51] : memref<1x1x1xf32, #tpu.memory_space<vmem>>, vector<1x1x1xf32>
      %81 = vector.shape_cast %80 : vector<1x1x1xf32> to vector<1x1xf32>
      %82 = vector.shape_cast %79 : vector<1x1xf32> to vector<1x1x1xf32>
      tpu.vector_store %arg7[%c0_49, %c0_50, %c0_51], %82 {strides = array<i32>} : memref<1x1x1xf32, #tpu.memory_space<vmem>>, vector<1x1x1xf32>,
    } else {
    }
    %c0 = arith.constant 0 : index
    %c0_1 = arith.constant 0 : index
    %c0_2 = arith.constant 0 : index
    %3 = vector.load %arg2[%c0, %c0_1, %c0_2] : memref<1x4x256xf32, #tpu.memory_space<vmem>>, vector<1x4x256xf32>
    %4 = vector.shape_cast %3 : vector<1x4x256xf32> to vector<4x256xf32>
    %c0_3 = arith.constant 0 : index
    %c0_4 = arith.constant 0 : index
    %c0_5 = arith.constant 0 : index
    %5 = vector.load %arg3[%c0_3, %c0_4, %c0_5] : memref<1x1x256xi32, #tpu.memory_space<vmem>>, vector<1x1x256xi32>
    %6 = vector.shape_cast %5 : vector<1x1x256xi32> to vector<1x256xi32>
    %7 = tpu.iota {dimensions = array<i32: 0>} : vector<4x256xi32>
    %8 = vector.broadcast %6 : vector<1x256xi32> to vector<4x256xi32>
    %9 = arith.cmpi eq, %7, %8 : vector<4x256xi32>
    %10 = arith.extui %9 : vector<4x256xi1> to vector<4x256xi32>
    %11 = arith.sitofp %10 : vector<4x256xi32> to vector<4x256xf32>
    %cst = arith.constant dense<0xFF800000> : vector<256xf32>
    %12 = vector.multi_reduction <maximumf>, %4, %cst [0] : vector<4x256xf32> to vector<256xf32>
    %13 = vector.shape_cast %12 : vector<256xf32> to vector<1x256xf32>
    %14 = vector.broadcast %13 : vector<1x256xf32> to vector<4x256xf32>
    %15 = arith.subf %4, %14 : vector<4x256xf32>
    %16 = math.exp %15 : vector<4x256xf32>
    %cst_6 = arith.constant dense<0.000000e+00> : vector<256xf32>
    %17 = vector.multi_reduction <add>, %16, %cst_6 [0] : vector<4x256xf32> to vector<256xf32>
    %18 = vector.shape_cast %17 : vector<256xf32> to vector<1x256xf32>
    %19 = tpu.reciprocal %18 {approx = true} : vector<1x256xf32> -> vector<1x256xf32>
    %20 = vector.broadcast %19 : vector<1x256xf32> to vector<4x256xf32>
    %21 = arith.mulf %16, %20 : vector<4x256xf32>
    %22 = math.log %18 : vector<1x256xf32>
    %23 = arith.addf %13, %22 : vector<1x256xf32>
    %c0_7 = arith.constant 0 : index
    %c0_8 = arith.constant 0 : index
    %c0_9 = arith.constant 0 : index
    %24 = vector.load %arg7[%c0_7, %c0_8, %c0_9] : memref<1x1x1xf32, #tpu.memory_space<vmem>>, vector<1x1x1xf32>
    %25 = vector.shape_cast %24 : vector<1x1x1xf32> to vector<1x1xf32>
    %26 = vector.shape_cast %23 : vector<1x256xf32> to vector<1x1x256xf32>
    %cst_10 = arith.constant dense<0.000000e+00> : vector<1xf32>
    %27 = vector.multi_reduction <add>, %26, %cst_10 [1, 2] : vector<1x1x256xf32> to vector<1xf32>
    %28 = vector.shape_cast %27 : vector<1xf32> to vector<1x1x1xf32>
    %29 = vector.extract %28[0, 0, 0] : f32 from vector<1x1x1xf32>
    %30 = arith.mulf %4, %11 : vector<4x256xf32>
    %31 = vector.shape_cast %30 : vector<4x256xf32> to vector<1x4x256xf32>
    %cst_11 = arith.constant dense<0.000000e+00> : vector<1xf32>
    %32 = vector.multi_reduction <add>, %31, %cst_11 [1, 2] : vector<1x4x256xf32> to vector<1xf32>
    %33 = vector.shape_cast %32 : vector<1xf32> to vector<1x1x1xf32>
    %34 = vector.extract %33[0, 0, 0] : f32 from vector<1x1x1xf32>
    %35 = arith.subf %29, %34 : f32
    %36 = vector.broadcast %35 : f32 to vector<1x1xf32>
    %37 = arith.addf %25, %36 : vector<1x1xf32>
    %c0_12 = arith.constant 0 : index
    %c0_13 = arith.constant 0 : index
    %c0_14 = arith.constant 0 : index
    %38 = vector.load %arg7[%c0_12, %c0_13, %c0_14] : memref<1x1x1xf32, #tpu.memory_space<vmem>>, vector<1x1x1xf32>
    %39 = vector.shape_cast %38 : vector<1x1x1xf32> to vector<1x1xf32>
    %40 = vector.shape_cast %37 : vector<1x1xf32> to vector<1x1x1xf32>
    tpu.vector_store %arg7[%c0_12, %c0_13, %c0_14], %40 {strides = array<i32>} : memref<1x1x1xf32, #tpu.memory_space<vmem>>, vector<1x1x1xf32>,
    %c0_15 = arith.constant 0 : index
    %c0_16 = arith.constant 0 : index
    %c0_17 = arith.constant 0 : index
    %41 = vector.load %arg4[%c0_15, %c0_16, %c0_17] : memref<1x4x1xf32, #tpu.memory_space<vmem>>, vector<1x4x1xf32>
    %42 = vector.shape_cast %41 : vector<1x4x1xf32> to vector<4x1xf32>
    %43 = arith.mulf %21, %11 : vector<4x256xf32>
    %cst_18 = arith.constant dense<0.000000e+00> : vector<4xf32>
    %44 = vector.multi_reduction <add>, %43, %cst_18 [1] : vector<4x256xf32> to vector<4xf32>
    %45 = vector.shape_cast %44 : vector<4xf32> to vector<4x1xf32>
    %46 = arith.addf %42, %45 : vector<4x1xf32>
    %c0_19 = arith.constant 0 : index
    %c0_20 = arith.constant 0 : index
    %c0_21 = arith.constant 0 : index
    %47 = vector.load %arg4[%c0_19, %c0_20, %c0_21] : memref<1x4x1xf32, #tpu.memory_space<vmem>>, vector<1x4x1xf32>
    %48 = vector.shape_cast %47 : vector<1x4x1xf32> to vector<4x1xf32>
    %49 = vector.shape_cast %46 : vector<4x1xf32> to vector<1x4x1xf32>
    tpu.vector_store %arg4[%c0_19, %c0_20, %c0_21], %49 {strides = array<i32>} : memref<1x4x1xf32, #tpu.memory_space<vmem>>, vector<1x4x1xf32>,
    %c0_22 = arith.constant 0 : index
    %c0_23 = arith.constant 0 : index
    %c0_24 = arith.constant 0 : index
    %50 = vector.load %arg5[%c0_22, %c0_23, %c0_24] : memref<1x4x1xf32, #tpu.memory_space<vmem>>, vector<1x4x1xf32>
    %51 = vector.shape_cast %50 : vector<1x4x1xf32> to vector<4x1xf32>
    %52 = arith.mulf %21, %21 : vector<4x256xf32>
    %cst_25 = arith.constant dense<0.000000e+00> : vector<4xf32>
    %53 = vector.multi_reduction <add>, %52, %cst_25 [1] : vector<4x256xf32> to vector<4xf32>
    %54 = vector.shape_cast %53 : vector<4xf32> to vector<4x1xf32>
    %55 = arith.addf %51, %54 : vector<4x1xf32>
    %c0_26 = arith.constant 0 : index
    %c0_27 = arith.constant 0 : index
    %c0_28 = arith.constant 0 : index
    %56 = vector.load %arg5[%c0_26, %c0_27, %c0_28] : memref<1x4x1xf32, #tpu.memory_space<vmem>>, vector<1x4x1xf32>
    %57 = vector.shape_cast %56 : vector<1x4x1xf32> to vector<4x1xf32>
    %58 = vector.shape_cast %55 : vector<4x1xf32> to vector<1x4x1xf32>
    tpu.vector_store %arg5[%c0_26, %c0_27, %c0_28], %58 {strides = array<i32>} : memref<1x4x1xf32, #tpu.memory_space<vmem>>, vector<1x4x1xf32>,
    %c0_29 = arith.constant 0 : index
    %c0_30 = arith.constant 0 : index
    %c0_31 = arith.constant 0 : index
    %59 = vector.load %arg6[%c0_29, %c0_30, %c0_31] : memref<1x4x1xf32, #tpu.memory_space<vmem>>, vector<1x4x1xf32>
    %60 = vector.shape_cast %59 : vector<1x4x1xf32> to vector<4x1xf32>
    %cst_32 = arith.constant dense<0.000000e+00> : vector<4xf32>
    %61 = vector.multi_reduction <add>, %11, %cst_32 [1] : vector<4x256xf32> to vector<4xf32>
    %62 = vector.shape_cast %61 : vector<4xf32> to vector<4x1xf32>
    %63 = arith.addf %60, %62 : vector<4x1xf32>
    %c0_33 = arith.constant 0 : index
    %c0_34 = arith.constant 0 : index
    %c0_35 = arith.constant 0 : index
    %64 = vector.load %arg6[%c0_33, %c0_34, %c0_35] : memref<1x4x1xf32, #tpu.memory_space<vmem>>, vector<1x4x1xf32>
    %65 = vector.shape_cast %64 : vector<1x4x1xf32> to vector<4x1xf32>
    %66 = vector.shape_cast %63 : vector<4x1xf32> to vector<1x4x1xf32>
    tpu.vector_store %arg6[%c0_33, %c0_34, %c0_35], %66 {strides = array<i32>} : memref<1x4x1xf32, #tpu.memory_space<vmem>>, vector<1x4x1xf32>,
    return
  }
  func.func @transform_0(%arg0: i32, %arg1: i32) -> (i32, i32, i32) {
    %c0_i32 = arith.constant 0 : i32
    %c0_i32_0 = arith.constant 0 : i32
    return %arg0, %c0_i32, %arg1 : i32, i32, i32
  }
  func.func @transform_1(%arg0: i32, %arg1: i32) -> (i32, i32, i32) {
    %c0_i32 = arith.constant 0 : i32
    %c0_i32_0 = arith.constant 0 : i32
    return %arg0, %c0_i32, %arg1 : i32, i32, i32
  }
  func.func @transform_2(%arg0: i32, %arg1: i32) -> (i32, i32, i32) {
    %c0_i32 = arith.constant 0 : i32
    %c0_i32_0 = arith.constant 0 : i32
    %c0_i32_1 = arith.constant 0 : i32
    return %arg0, %c0_i32, %c0_i32_0 : i32, i32, i32
  }
  func.func @transform_3(%arg0: i32, %arg1: i32) -> (i32, i32, i32) {
    %c0_i32 = arith.constant 0 : i32
    %c0_i32_0 = arith.constant 0 : i32
    %c0_i32_1 = arith.constant 0 : i32
    return %arg0, %c0_i32, %c0_i32_0 : i32, i32, i32
  }
  func.func @transform_4(%arg0: i32, %arg1: i32) -> (i32, i32, i32) {
    %c0_i32 = arith.constant 0 : i32
    %c0_i32_0 = arith.constant 0 : i32
    %c0_i32_1 = arith.constant 0 : i32
    return %arg0, %c0_i32, %c0_i32_0 : i32, i32, i32
  }
  func.func @transform_5(%arg0: i32, %arg1: i32) -> (i32, i32, i32) {
    %c0_i32 = arith.constant 0 : i32
    %c0_i32_0 = arith.constant 0 : i32
    %c0_i32_1 = arith.constant 0 : i32
    return %arg0, %c0_i32, %c0_i32_0 : i32, i32, i32
  }
}

</mosaic_0001>

<bundles_post_ra>
// kernel: tpu_custom_call.1
= control target key start
LH: loop header
LB: loop body
LE: loop exit
PB: predicated region body
PF: predicated region fallthrough
CT: control target
= control target key end

     0   :  { %11 = vsyncpa [#allocation3], 0  ;;  %s1124_s0 = inlined_call_operand.hbm [shape: f32[2,4,256], index: 0, kind: input, shape index: {}]   ;;  %s1125_s1 = inlined_call_operand.hbm [shape: s32[2,1,256], index: 1, kind: input, shape index: {}]   ;;  %s1126_s2 = inlined_call_operand.vmem [shape: f32[2,4,1], index: 2, kind: output, shape index: {0}]   ;;  %s1127_s3 = inlined_call_operand.vmem [shape: f32[2,4,1], index: 3, kind: output, shape index: {1}]   ;;  %s1128_s4 = inlined_call_operand.vmem [shape: f32[2,4,1], index: 4, kind: output, shape index: {2}]   ;;  %s1129_s5 = inlined_call_operand.vmem [shape: f32[2,1,1], index: 5, kind: output, shape index: {3}]  }
   0x1   :  { %13 = vsyncpa [#allocation3 + $0x1], 0 }
   0x2   :  { %14 = vsyncpa [#allocation5], 0 }
   0x3   :  { %16 = vsyncpa [#allocation5 + $0x1], 0  ;;  %s921_s18 = smov 0   ;;  %s923_s19 = smov 0  }
   0x4   :  { %s925_s20 = smov 0   ;;  %s927_s21 = smov 0  }
   0x5   :  { %s929_s22 = smov 0   ;;  %s931_s23 = smov 0  }
   0x6 LB: > { %s674_s24 = sadd.s32 4294967295, %s886_s23   ;;  %s34_s25 = sadd.s32 1, %s882_s22  ;;  %s886_s23 = sphi %s931_s23, %s22_s23   ;;  %s882_s22 = sphi %s929_s22, %s1143_s22   ;;  %s878_s21 = sphi %s927_s21, %s1142_s21   ;;  %s874_s20 = sphi %s925_s20, %s1141_s20   ;;  %s870_s19 = sphi %s923_s19, %s1140_s19   ;;  %s866_s18 = sphi %s921_s18, %s1139_s18  }
   0x7   : > { %p36_p0 = scmp.ge.s32.totalorder %s34_s25, 2  ;;  %s43_s26 = sadd.s32 1, %s874_s20 }
   0x8   : > { %p50_p1 = scmp.ne.s32.totalorder %s874_s20, %s870_s19  ;;  %p51_p2 = scmp.eq.s32.totalorder %s886_s23, 0 }
   0x9   : > { %s1145_s25 = smov (%p36_p0, %s34_s25), 0  ;;  %p56_p4 = scmp.ne.s32.totalorder %s870_s19, %s866_s18 }
   0xa   : > { %p957_p3 = por %p51_p2, %p50_p1  ;;  %s38_s28 = ssub.s32 %s882_s22, %s1145_s25 }
   0xb   : > { %p57_p5 = scmp.eq.s32.totalorder %s674_s24, 0  ;;  %p41_p6 = scmp.eq.s32.totalorder %s38_s28, 0 }
   0xc   : > { %p711_p8 = scmp.lt.s32.totalorder %s886_s23, 2  ;;  %s973_s6 = sand.u32 1, %s874_s20  }
   0xd   : > { %p964_p7 = por %p57_p5, %p56_p4  ;;  %s694_s7 = sshll.u32 %s882_s22, 7 }
   0xe   : > { %s970_s30 = scalar_select %p41_p6, %s874_s20, %s43_s26  }
   0xf   : > { %s1132_s29 = scalar_select %p964_p7, 1, 0 }
  0x10   : > { %s678_s8 = sshll.u32 %s973_s6, 3  ;;  %s980_s11 = scalar_lea.hbm %s1124_s0, %s694_s7 }
  0x11   : > { %s216_s12 = scalar_lea.vmem [#allocation2], %s678_s8  ;;  %p984_p9 = pnand %p711_p8, %p957_p3 }
  0x12   : > { %s226_s13 = sshll.u32 %s216_s12, 4  ;;  %s213_s15 = scalar_lea.sflag [#allocation3], %s973_s6  ;;  %s988_s13 = int_to_ptr.vmem [resolvable:$true] %s226_s13 }
  0x13   : > { %s772_s16 = scalar_lea.hbm %s980_s11, 128  ;;  %p774_p13 = pneg %p984_p9 }
  0x14   : > { %p773_p12 = scmp.ne.s32.totalorder %s980_s11, %s772_s16  ;;  %s777_s24 = scalar_lea.hbm %s1124_s0, 256 }
  0x15   : > { %p778_p2 = scmp.lt.u32.totalorder %s980_s11, %s1124_s0  ;;  %p779_p3 = scmp.lt.u32.totalorder %s777_s24, %s772_s16 }
  0x16   : > { %p775_p0 = pnand %p774_p13, %p773_p12  ;;  %p781_p5 = scmp.lt.u32.totalorder %s772_s16, %s980_s11 }
  0x17   : > { %p780_p4 = por %p779_p3, %p778_p2 }
  0x18   : > { %p776_p1 = pneg %p775_p0 }
  0x19   : > { %p782_p6 = por %p781_p5, %p780_p4 }
  0x1b   : > { %p783_p8 = pnand %p782_p6, %p776_p1 }
  0x1d   : > { %786 = shalt.err (!%p783_p8)
}
  0x1e   : > { %s787_s28 = scalar_lea.vmem %s988_s13, 128  ;;  %s888_s7 = smov [#allocation2]  }
  0x1f   : > { %p788_p12 = scmp.ne.s32.totalorder %s988_s13, %s787_s28  ;;  %s792_s8 = sshll.u32 %s888_s7, 4  ;;  %s793_s8 = int_to_ptr.vmem [resolvable:$false] %s792_s8 }
  0x20   : > { %s794_s9 = scalar_lea.vmem %s793_s8, 256  ;;  %p795_p11 = scmp.lt.s32.totalorder %s988_s13, %s793_s8 }
  0x21   : > { %p790_p0 = pnand %p788_p12, %p774_p13  ;;  %p796_p2 = scmp.lt.s32.totalorder %s794_s9, %s787_s28 }
  0x23   : > { %p791_p10 = pneg %p790_p0  ;;  %p797_p3 = por %p796_p2, %p795_p11 }
  0x25   : > { %p798_p4 = pnand %p797_p3, %p791_p10 }
  0x27   : > { %801 = shalt.err (!%p798_p4)
}
  0x28   : > { %707 = dma.hbm_to_vmem [thread:$0]  (!%p984_p9), %s980_s11, 128, %s988_s13, %s213_s15  }
  0x29   : > { %p1134_p1 = scmp.lt.s32.totalorder %s886_s23, 3  ;;  %p1135_p5 = scmp.ge.s32.totalorder %s886_s23, 1 }
  0x2a   : > { %s681_s12 = sshll.u32 %s973_s6, 1  ;;  %s695_s16 = sshll.u32 %s882_s22, 5 }
  0x2b   : > { %p1022_p6 = pnand %p1135_p5, %p1134_p1  ;;  %s1031_s24 = scalar_lea.hbm %s1125_s1, %s695_s16 }
  0x2c   : > { %s237_s26 = scalar_lea.vmem [#allocation4], %s681_s12  ;;  %s234_s11 = scalar_lea.sflag [#allocation5], %s973_s6 }
  0x2d   : > { %s1136_s10 = scalar_select %p1022_p6, 1, 0 }
  0x2e   : > { %s247_s27 = sshll.u32 %s237_s26, 4  ;;  %s802_s13 = scalar_lea.hbm %s1031_s24, 32  ;;  %s248_s27 = int_to_ptr.vmem [resolvable:$true] %s247_s27 }
  0x2f   : > { %p803_p10 = scmp.ne.s32.totalorder %s1031_s24, %s802_s13  ;;  %s807_s7 = scalar_lea.hbm %s1125_s1, 64 }
  0x30   : > { %p808_p12 = scmp.lt.u32.totalorder %s1031_s24, %s1125_s1  ;;  %p809_p0 = scmp.lt.u32.totalorder %s807_s7, %s802_s13 }
  0x31   : > { %p805_p11 = pnand %p803_p10, %p774_p13  ;;  %p811_p3 = scmp.lt.u32.totalorder %s802_s13, %s1031_s24 }
  0x32   : > { %p810_p2 = por %p809_p0, %p808_p12 }
  0x33   : > { %p806_p8 = pneg %p805_p11 }
  0x34   : > { %p812_p4 = por %p811_p3, %p810_p2 }
  0x36   : > { %p813_p1 = pnand %p812_p4, %p806_p8 }
  0x38   : > { %816 = shalt.err (!%p813_p1)
}
  0x39   : > { %s817_s6 = scalar_lea.vmem %s248_s27, 32  ;;  %s889_s12 = smov [#allocation4]  }
  0x3a   : > { %p818_p5 = scmp.ne.s32.totalorder %s248_s27, %s817_s6  ;;  %s822_s16 = sshll.u32 %s889_s12, 4  ;;  %s823_s16 = int_to_ptr.vmem [resolvable:$false] %s822_s16 }
  0x3b   : > { %s824_s17 = scalar_lea.vmem %s823_s16, 64  ;;  %p825_p7 = scmp.lt.s32.totalorder %s248_s27, %s823_s16 }
  0x3c   : > { %p820_p10 = pnand %p818_p5, %p774_p13  ;;  %p826_p6 = scmp.lt.s32.totalorder %s824_s17, %s817_s6 }
  0x3e   : > { %p821_p11 = pneg %p820_p10  ;;  %p827_p0 = por %p826_p6, %p825_p7 }
  0x40   : > { %p828_p12 = pnand %p827_p0, %p821_p11 }
  0x42   : > { %831 = shalt.err (!%p828_p12)
}
  0x43   : > { %710 = dma.hbm_to_vmem [thread:$0]  (!%p984_p9), %s1031_s24, 32, %s248_s27, %s234_s11  }
  0x44   : > { %p1137_p8 = scmp.ne.s32.totalorder %s1136_s10, 0 }
  0x45   : > { %s258_s18 = sand.u32 (!%p1137_p8), 1, %s870_s19   ;;  %p1138_p13 = scmp.ne.s32.totalorder (!%p1137_p8), %s1132_s29, 0 }
  0x46   : > { %256 = sbr.rel (%p1137_p8) target bundleno = 361 (0x169), region = 28  ;;  %s685_s26 = sshll.u32 (!%p1137_p8), %s258_s18, 3 }
  0x47   : > { %s259_s13 = scalar_lea.sflag (!%p1137_p8), [#allocation3], %s258_s18  ;;  %s262_s15 = scalar_lea.vmem (!%p1137_p8), [#allocation2], %s685_s26 }
  0x4d   : > { %857 = dma.done.wait (%p1138_p13), %s259_s13, 128  }
  0x4e   : > { %859 = vsyncadd (%p1138_p13), %s259_s13, 4294967168  ;;  %s686_s28 = sshll.u32 %s258_s18, 1  ;;  %s268_s7 = scalar_lea.sflag [#allocation5], %s258_s18 }
  0x4f   : > { %s1060_s14 = scalar_lea.vmem [#allocation4], %s686_s28 }
  0x50   : > { %861 = dma.done.wait (%p1138_p13), %s268_s7, 32  }
  0x51   : > { %863 = vsyncadd (%p1138_p13), %s268_s7, 4294967264  ;;  %vm361_vm0 = vcmask 1043456   ;;  %v340_v0 = vld [vmem:[%s262_s15] sm:$0xff]  ;;  %v342_v19 = vlaneseq  ;;  %v341_v32 = vld [vmem:[%s1060_s14] sm:$0x3]  ;;  %v890_v42 = vmov 0.0  }
  0x52   : > { %v359_v1 = vcombine.high %v340_v0, %v340_v0  ;;  %v362_v2 = vsel %vm361_vm0, %v340_v0, -inf  ;;  %vm414_vm3 = vcmask 1040384   ;;  %p315_p7 = scmp.lt.s32.totalorder %s878_s21, 1  ;;  %vm334_vm4 = vcmask 3072  }
  0x53   : > { %v363_v3 = vrot.slane %v362_v2, 4  ;;  %v343_v23 = vshrl.u32 %v342_v19, 7  ;;  %vm338_vm5 = vcmask 0  }
  0x54   : > { %v369_v4 = vsel %vm361_vm0, %v359_v1, -inf  ;;  %s1147_s21 = smov (!%p315_p7, %s878_s21), 1 }
  0x55   : > { %v364_v5 = vmax.f32 %v362_v2, %v363_v3  ;;  %v370_v6 = vrot.slane %v369_v4, 4  ;;  %v346_v28 = vsub.s32 0, %v343_v23  ;;  %v350_v29 = vsub.s32 1, %v343_v23  ;;  %s687_s29 = sshll.u32 %s1147_s21, 2  ;;  %s1088_s9 = scalar_lea.vmem %s1129_s5, %s1147_s21 }
  0x56   : > { %s318_s27 = scalar_lea.vmem %s1126_s2, %s687_s29  ;;  %s326_s16 = scalar_lea.vmem %s1128_s4, %s687_s29  ;;  %339 = vst.msk [vmem:[%s1088_s9] sm:$0x1] %vm338_vm5, %v890_v42 }
  0x57   : > { %v365_v7 = vrot.slane %v364_v5, 2  ;;  %v371_v8 = vmax.f32 %v369_v4, %v370_v6  ;;  %v347_v35 = vrot.slane %v341_v32, %v346_v28  ;;  %v351_v36 = vrot.slane %v341_v32, %v350_v29  ;;  %335 = vst.msk [vmem:[%s318_s27] sm:$0xf] %vm334_vm4, %v890_v42  ;;  %337 = vst.msk [vmem:[%s326_s16] sm:$0xf] %vm334_vm4, %v890_v42  ;;  %s322_s26 = scalar_lea.vmem %s1127_s3, %s687_s29 }
  0x58   : > { %336 = vst.msk [vmem:[%s322_s26] sm:$0xf] %vm334_vm4, %v890_v42 }
  0x59   : > { %v366_v9 = vmax.f32 %v364_v5, %v365_v7  ;;  %v372_v10 = vrot.slane %v371_v8, 2  ;;  %vm352_vm1 = vcmp.eq.s32.totalorder %v343_v23, %v347_v35  ;;  %vm353_vm2 = vcmp.eq.s32.totalorder %v343_v23, %v351_v36 }
  0x5a   : > { %v690_v43 = vsel %vm352_vm1, 1.0, %v890_v42  ;;  %v691_v44 = vsel %vm353_vm2, 1.0, %v890_v42 }
  0x5b   : > { %v367_v11 = vrot.slane %v366_v9, 1  ;;  %v373_v12 = vmax.f32 %v371_v8, %v372_v10  ;;  %v429_v45 = vcombine.low %v690_v43, %v691_v44  ;;  %v478_v5 = vsel %vm361_vm0, %v690_v43, 0.0 }
  0x5c   : > { %v479_v6 = vsel %vm361_vm0, %v691_v44, 0.0 }
  0x5d   : > { %v368_v13 = vmax.f32 %v366_v9, %v367_v11  ;;  %v374_v14 = vrot.slane %v373_v12, 1  ;;  %v431_v46 = vmul.f32 %v429_v45, %v340_v0  ;;  %v480_v11 = vadd.f32 %v479_v6, %v478_v5  ;;  %v413_v36 = vld [vmem:[%s1088_s9] sm:$0x1] }
  0x5f   : > { %v375_v15 = vmax.f32 %v373_v12, %v374_v14  ;;  %v433_v53 = vcombine.high %v431_v46, %v431_v46  ;;  %v435_v60 = vsel %vm361_vm0, %v431_v46, 0.0 }
  0x61   : > { %v378_v16 = vcombine.low %v368_v13, %v375_v15  ;;  %v436_v61 = vsel %vm361_vm0, %v433_v53, 0.0 }
  0x62   : > { %v437_v1 = vadd.f32 %v436_v61, %v435_v60 }
  0x63   : > { %v380_v17 = vsub.f32 %v340_v0, %v378_v16  ;;  %v452_v16 = vld [vmem:[%s318_s27] sm:$0xf] }
  0x65   : > { %v381_v18 = vmul.f32 1.442695, %v380_v17 }
  0x67   : > { %762 = vpow2.f32 %v381_v18 }
  0x71   : > { %v763_v20 = vpop.eup %762 }
  0x72   : > { %v384_v21 = vcombine.high %v763_v20, %v763_v20  ;;  %v386_v22 = vsel %vm361_vm0, %v763_v20, 0.0 }
  0x73   : > { %v387_v24 = vrot.slane %v386_v22, 4 }
  0x74   : > { %v393_v25 = vsel %vm361_vm0, %v384_v21, 0.0 }
  0x75   : > { %v388_v26 = vadd.f32 %v387_v24, %v386_v22  ;;  %v394_v27 = vrot.slane %v393_v25, 4  ;;  %v477_v22 = vld [vmem:[%s326_s16] sm:$0xf] }
  0x77   : > { %v389_v30 = vrot.slane %v388_v26, 2  ;;  %v395_v31 = vadd.f32 %v394_v27, %v393_v25  ;;  %v465_v25 = vld [vmem:[%s322_s26] sm:$0xf] }
  0x79   : > { %v390_v33 = vadd.f32 %v389_v30, %v388_v26  ;;  %v396_v34 = vrot.slane %v395_v31, 2 }
  0x7b   : > { %v391_v37 = vrot.slane %v390_v33, 1  ;;  %v397_v38 = vadd.f32 %v396_v34, %v395_v31 }
  0x7d   : > { %v392_v39 = vadd.f32 %v391_v37, %v390_v33  ;;  %v398_v40 = vrot.slane %v397_v38, 1 }
  0x7f   : > { %v399_v41 = vadd.f32 %v398_v40, %v397_v38  ;;  %764 = vrcp.f32 %v392_v39 }
  0x80   : > { %766 = vlog2.f32 %v392_v39 }
  0x81   : > { %768 = vlog2.f32 %v399_v41 }
  0x82   : > { %770 = vrcp.f32 %v399_v41 }
  0x89   : > { %v765_v47 = vpop.eup %764 }
  0x8a   : > { %v767_v48 = vpop.eup %766 }
  0x8b   : > { %v769_v49 = vpop.eup %768  ;;  %v408_v50 = vmul.f32 0.6931472, %v767_v48 }
  0x8c   : > { %v771_v51 = vpop.eup %770  ;;  %v410_v52 = vmul.f32 0.6931472, %v769_v49 }
  0x8d   : > { %v411_v54 = vadd.f32 %v408_v50, %v368_v13  ;;  %v404_v55 = vcombine.low %v765_v47, %v771_v51 }
  0x8e   : > { %v412_v56 = vadd.f32 %v410_v52, %v375_v15 }
  0x8f   : > { %v415_v57 = vsel %vm414_vm3, %v411_v54, 0.0  ;;  %v406_v58 = vmul.f32 %v763_v20, %v404_v55 }
  0x90   : > { %v416_v59 = vsel %vm414_vm3, %v412_v56, 0.0 }
  0x91   : > { %v417_v62 = vadd.f32 %v416_v59, %v415_v57  ;;  %v453_v63 = vmul.f32 %v429_v45, %v406_v58  ;;  %v466_v0 = vmul.f32 %v406_v58, %v406_v58 }
  0x93   : > { %418 = vadd.xlane.f32.xlu0 %v417_v62  ;;  %v455_v2 = vcombine.high %v453_v63, %v453_v63  ;;  %v457_v3 = vsel %vm361_vm0, %v453_v63, 0.0  ;;  %v468_v4 = vcombine.high %v466_v0, %v466_v0  ;;  %v470_v8 = vsel %vm361_vm0, %v466_v0, 0.0 }
  0x95   : > { %v458_v7 = vsel %vm361_vm0, %v455_v2, 0.0  ;;  %v471_v9 = vsel %vm361_vm0, %v468_v4, 0.0 }
  0x96   : > { %v459_v10 = vadd.f32 %v458_v7, %v457_v3  ;;  %v472_v12 = vadd.f32 %v471_v9, %v470_v8 }
  0x97   : > { %438 = vadd.xlane.f32.xlu0 %v437_v1 }
  0x98   : > { %460 = vadd.xlane.f32.xlu1 %v459_v10 }
  0x9b   : > { %481 = vadd.xlane.f32.xlu0 %v480_v11 }
  0x9c   : > { %473 = vadd.xlane.f32.xlu1 %v472_v12 }
 0x120   : > { %v419_v13 = vpop.xlane.xlu0 %418 }
 0x121   : > { %v420_v14 = vrot.slane %v419_v13, 4 }
 0x123   : > { %v421_v15 = vadd.f32 %v420_v14, %v419_v13 }
 0x124   : > { %v439_v17 = vpop.xlane.xlu0 %438 }
 0x125   : > { %v422_v18 = vrot.slane %v421_v15, 2  ;;  %v440_v19 = vrot.slane %v439_v17, 4  ;;  %v461_v20 = vpop.xlane.xlu1 %460 }
 0x126   : > { %v462_v21 = vadd.f32 %v461_v20, %v452_v16 }
 0x127   : > { %v441_v23 = vadd.f32 %v440_v19, %v439_v17  ;;  %v423_v24 = vadd.f32 %v422_v18, %v421_v15 }
 0x128   : > { %464 = vst.msk [vmem:[%s318_s27] sm:$0xf] %vm334_vm4, %v462_v21  ;;  %v482_v26 = vpop.xlane.xlu0 %481 }
 0x129   : > { %v442_v27 = vrot.slane %v441_v23, 2  ;;  %v424_v28 = vrot.slane %v423_v24, 1  ;;  %v483_v29 = vadd.f32 %v482_v26, %v477_v22  ;;  %v474_v30 = vpop.xlane.xlu1 %473 }
 0x12a   : > { %v475_v31 = vadd.f32 %v474_v30, %v465_v25 }
 0x12b   : > { %v425_v32 = vadd.f32 %v424_v28, %v423_v24  ;;  %v443_v33 = vadd.f32 %v442_v27, %v441_v23  ;;  %484 = vst.msk [vmem:[%s326_s16] sm:$0xf] %vm334_vm4, %v483_v29 }
 0x12c   : > { %476 = vst.msk [vmem:[%s322_s26] sm:$0xf] %vm334_vm4, %v475_v31 }
 0x12d   : > { %696 = vpush %v425_v32  ;;  %v444_v34 = vrot.slane %v443_v33, 1 }
 0x12f   : > { %v445_v35 = vadd.f32 %v444_v34, %v443_v33 }
 0x131   : > { %698 = vpush %v445_v35 }
 0x15e   : > { %s697_s21 = spop %696 }
 0x162   : > { %s699_s13 = spop %698 }
 0x163   : > { %s447_s15 = ssub.f32 %s697_s21, %s699_s13 }
 0x165   : > { %v448_v37 = vstv %s447_s15 }
 0x166   : > { %v449_v38 = vadd.f32 %v448_v37, %v413_v36 }
 0x168   : > { %451 = vst.msk [vmem:[%s1088_s9] sm:$0x1] %vm338_vm5, %v449_v38 }
 0x169 PF: > { %s22_s23 = sadd.s32 1, %s886_s23   ;;  %s1139_s18 = smov %s870_s19 }
 0x16a   : > { %p19_p9 = scmp.ge.s32.totalorder %s22_s23, 4   ;;  %s1140_s19 = smov %s874_s20 }
 0x16b   : > { %s1141_s20 = smov %s970_s30  ;;  %s1142_s21 = smov %s882_s22 }
 0x16c   : > { %s1143_s22 = smov %s1145_s25  ;;  %21 = sbr.rel (!%p19_p9) target bundleno = 6 (0x6), region = 121 }
 0x173   :  { %544 = vsyncpa [#allocation3], 1 }
 0x174   :  { %546 = vsyncpa [#allocation3 + $0x1], 1 }
 0x175   :  { %547 = vsyncpa [#allocation5], 1 }
 0x176   :  { %549 = vsyncpa [#allocation5 + $0x1], 1 }

</bundles_post_ra>
